<compile_context>
chip_gen: v6e
topology: v6e:2x2x1
jax: 0.10.0
libtpu: 0.0.40
codegen_flags: <defaults>
</compile_context>

<pallas_src>
import jax
import jax.numpy as jnp
from jax.experimental import pallas as pl
from jax.experimental.pallas import tpu as pltpu


KH = KW = 3  # fixed 3x3 kernel, single in/out channel


def _conv3x3_mxu_kernel(x_ref, t_ref, b_ref, o_ref):
    # x_ref: VMEM (N, H*W)      native input dtype (cast fused here)
    # t_ref: VMEM (H*W, OH*OW)  f32 Toeplitz (unrolled conv) matrix
    # b_ref: SMEM (1,)          f32 bias
    # o_ref: VMEM (N, OH*OW)    f32
    x = x_ref[...].astype(jnp.float32)
    o_ref[...] = (
        jnp.dot(x, t_ref[...], preferred_element_type=jnp.float32) + b_ref[0]
    )


def _build_toeplitz(weight, h, w, oh, ow):
    """Build T (H*W, OH*OW) with T[(r+di)*W + (c+dj), r*OW + c] = weight[di, dj].

    x_flat @ T reproduces the VALID 3x3 convolution in the flattened domain.
    Only 9 scatter updates -> constant-folds for fixed weights, tiny otherwise.
    """
    wk = weight.reshape(KH, KW).astype(jnp.float32)
    r = jnp.arange(oh)
    c = jnp.arange(ow)
    col_idx = (r[:, None] * ow + c[None, :]).reshape(-1)          # (OH*OW,)
    t = jnp.zeros((h * w, oh * ow), jnp.float32)
    for di in range(KH):
        for dj in range(KW):
            row_idx = ((r[:, None] + di) * w + (c[None, :] + dj)).reshape(-1)
            t = t.at[row_idx, col_idx].set(wk[di, dj])
    return t


@jax.jit
def conv2d_1x1ch_3x3(x_nchw, weight, bias):
    """Forward pass of CNNModel1: x.float(); Conv2d(1, 1, 3), VALID padding.

    x_nchw: (N, 1, H, W) any dtype; weight: (1, 1, 3, 3); bias: (1,).
    """
    n, ch, h, w = x_nchw.shape
    assert ch == 1
    oh, ow = h - KH + 1, w - KW + 1

    x_flat = x_nchw.reshape(n, h * w)                 # free reshape (C == 1)
    t = _build_toeplitz(weight, h, w, oh, ow)         # (H*W, OH*OW) f32
    b_flat = bias.reshape(1).astype(jnp.float32)

    cost = pl.CostEstimate(
        flops=2 * n * (h * w) * (oh * ow),
        transcendentals=0,
        bytes_accessed=(x_flat.size * x_flat.dtype.itemsize
                        + t.size * 4 + n * oh * ow * 4 + 4),
    )

    out = pl.pallas_call(
        _conv3x3_mxu_kernel,
        out_shape=jax.ShapeDtypeStruct((n, oh * ow), jnp.float32),
        in_specs=[
            pl.BlockSpec(memory_space=pltpu.MemorySpace.VMEM),   # x (N, H*W)
            pl.BlockSpec(memory_space=pltpu.MemorySpace.VMEM),   # T (H*W, OH*OW)
            pl.BlockSpec(memory_space=pltpu.MemorySpace.SMEM),   # bias (1,)
        ],
        out_specs=pl.BlockSpec(memory_space=pltpu.MemorySpace.VMEM),
        cost_estimate=cost,
    )(x_flat, t, b_flat)

    return out.reshape(n, 1, oh, ow)                  # free reshape (C == 1)


if __name__ == "__main__":
    key = jax.random.PRNGKey(0)
    kx, kw, kb = jax.random.split(key, 3)

    # Input matching the module's usage: torch.randn(20, 1, 12, 12)
    x = jax.random.normal(kx, (20, 1, 12, 12), dtype=jnp.float32)

    # Deterministic parameter init (PyTorch default: U(-1/sqrt(fan_in), +),
    # fan_in = 1*3*3 = 9 -> bound = 1/3)
    bound = 1.0 / 3.0
    weight = jax.random.uniform(kw, (1, 1, KH, KW), jnp.float32, -bound, bound)
    bias = jax.random.uniform(kb, (1,), jnp.float32, -bound, bound)

    y = conv2d_1x1ch_3x3(x, weight, bias)
    y = jax.block_until_ready(y)

    # Independent reference: XLA conv (NCHW / OIHW, VALID padding), full precision.
    y_ref = jax.lax.conv_general_dilated(
        x.astype(jnp.float32), weight, window_strides=(1, 1), padding="VALID",
        dimension_numbers=("NCHW", "OIHW", "NCHW"),
        precision=jax.lax.Precision.HIGHEST,
    ) + bias.reshape(1, 1, 1, 1)

    assert y.shape == (20, 1, 10, 10)
    assert jnp.allclose(y, y_ref, atol=1e-4, rtol=1e-4)

    print("KERNEL_OK")
</pallas_src>

<mosaic_0001>
module attributes {stable_mosaic.version = 11 : i64} {
  func.func @_conv3x3_mxu_kernel(%arg0: memref<20x144xf32, #tpu.memory_space<vmem>>, %arg1: memref<144x100xf32, #tpu.memory_space<vmem>>, %arg2: memref<1xf32, #tpu.memory_space<smem>>, %arg3: memref<20x100xf32, #tpu.memory_space<vmem>>) attributes {dimension_semantics = [], scalar_prefetch = 0 : i64, scratch_operands = 0 : i64, tpu.core_type = #tpu.core_type<tc>} {
    %c0 = arith.constant 0 : index
    %c0_0 = arith.constant 0 : index
    %0 = vector.load %arg0[%c0, %c0_0] : memref<20x144xf32, #tpu.memory_space<vmem>>, vector<20x144xf32>
    %c0_1 = arith.constant 0 : index
    %c0_2 = arith.constant 0 : index
    %1 = vector.load %arg1[%c0_1, %c0_2] : memref<144x100xf32, #tpu.memory_space<vmem>>, vector<144x100xf32>
    %cst = arith.constant dense<0.000000e+00> : vector<20x100xf32>
    %2 = tpu.matmul %0, %1, %cst {dimension_numbers = #tpu.dot_dimension_numbers<[1], [0], [0], [1], [0, 0, 1, 1], [], []>} : vector<20x144xf32>, vector<144x100xf32>, vector<20x100xf32> -> vector<20x100xf32>
    %c0_3 = arith.constant 0 : index
    %3 = memref.load %arg2[%c0_3] : memref<1xf32, #tpu.memory_space<smem>>
    %4 = vector.broadcast %3 : f32 to vector<20x100xf32>
    %5 = arith.addf %2, %4 : vector<20x100xf32>
    %c0_4 = arith.constant 0 : index
    %c0_5 = arith.constant 0 : index
    %6 = vector.load %arg3[%c0_4, %c0_5] : memref<20x100xf32, #tpu.memory_space<vmem>>, vector<20x100xf32>
    tpu.vector_store %arg3[%c0_4, %c0_5], %5 {strides = array<i32>} : memref<20x100xf32, #tpu.memory_space<vmem>>, vector<20x100xf32>,
    return
  }
}

</mosaic_0001>

<bundles_post_ra>
// kernel: conv2d_1x1ch_3x3.1
= control target key start
LH: loop header
LB: loop body
LE: loop exit
PB: predicated region body
PF: predicated region fallthrough
CT: control target
= control target key end

     0   :  { %v180_v0 = vmov 0.0   ;;  %vm41_vm0 = vcmask 130048   ;;  %vm131_vm1 = vcmask 818176   ;;  %vm134_vm2 = vcmask 814080   ;;  %s324_s1 = inlined_call_operand.vmem [shape: f32[144,100], index: 1, kind: input, shape index: {}]   ;;  %s325_s0 = inlined_call_operand.vmem [shape: f32[20,144], index: 0, kind: input, shape index: {}]   ;;  %s326_s2 = inlined_call_operand.<no memory space> [shape: f32[1], index: 2, kind: input, shape index: {}]   ;;  %s327_s3 = inlined_call_operand.vmem [shape: f32[20,100], index: 3, kind: output, shape index: {}]  }
   0x1   :  { %143 = vmatprep.subr.mxu1 %v180_v0  ;;  %v36_v1 = vld [vmem:[%s324_s1 + $0x78] sm:$0xff]  ;;  %51 = vmatprep.subr.mxu0 %v180_v0  ;;  %v35_v2 = vld [vmem:[%s324_s1 + $0x70] sm:$0xff]  ;;  %v34_v3 = vld [vmem:[%s324_s1 + $0x68] sm:$0xff]  ;;  %v40_v25 = vstv %s326_s2 }
   0x2   :  { %161 = vmatpush1.msra.mxu1 %v36_v1  ;;  %52 = vmatpush1.msra.mxu0 %v36_v1  ;;  %v33_v4 = vld [vmem:[%s324_s1 + $0x60] sm:$0xff]  ;;  %v32_v5 = vld [vmem:[%s324_s1 + $0x58] sm:$0xff]  ;;  %v31_v6 = vld [vmem:[%s324_s1 + $0x50] sm:$0xff] }
   0x3   :  { %144 = vmatprep.subr.mxu1 %v180_v0  ;;  %53 = vmatprep.subr.mxu0 %v180_v0  ;;  %v30_v7 = vld [vmem:[%s324_s1 + $0x48] sm:$0xff]  ;;  %v29_v8 = vld [vmem:[%s324_s1 + $0x40] sm:$0xff]  ;;  %v28_v9 = vld [vmem:[%s324_s1 + $0x38] sm:$0xff] }
   0x4   :  { %162 = vmatpush1.msra.mxu1 %v35_v2  ;;  %54 = vmatpush1.msra.mxu0 %v35_v2  ;;  %v27_v10 = vld [vmem:[%s324_s1 + $0x30] sm:$0xff]  ;;  %v26_v11 = vld [vmem:[%s324_s1 + $0x28] sm:$0xff]  ;;  %v25_v12 = vld [vmem:[%s324_s1 + $0x20] sm:$0xff] }
   0x5   :  { %145 = vmatprep.subr.mxu1 %v180_v0  ;;  %55 = vmatprep.subr.mxu0 %v180_v0  ;;  %v24_v13 = vld [vmem:[%s324_s1 + $0x18] sm:$0xff]  ;;  %v23_v14 = vld [vmem:[%s324_s1 + $0x10] sm:$0xff]  ;;  %v22_v15 = vld [vmem:[%s324_s1 + $0x8] sm:$0xff] }
   0x6   :  { %163 = vmatpush1.msra.mxu1 %v34_v3  ;;  %56 = vmatpush1.msra.mxu0 %v34_v3  ;;  %v21_v16 = vld [vmem:[%s324_s1] sm:$0xff]  ;;  %v38_v17 = vld [vmem:[%s324_s1 + $0x88] sm:$0xff]  ;;  %v18_v18 = vld [vmem:[%s325_s0 + $0x18] sm:$0xff] }
   0x7   :  { %146 = vmatprep.subr.mxu1 %v180_v0  ;;  %57 = vmatprep.subr.mxu0 %v180_v0  ;;  %v37_v19 = vld [vmem:[%s324_s1 + $0x80] sm:$0xff]  ;;  %v17_v20 = vld [vmem:[%s325_s0 + $0x10] sm:$0xff]  ;;  %v16_v21 = vld [vmem:[%s325_s0 + $0x8] sm:$0xff] }
   0x8   :  { %164 = vmatpush1.msra.mxu1 %v33_v4  ;;  %58 = vmatpush1.msra.mxu0 %v33_v4  ;;  %v20_v22 = vld [vmem:[%s325_s0 + $0x28] sm:$0xf]  ;;  %v15_v23 = vld [vmem:[%s325_s0] sm:$0xff] }
   0x9   :  { %147 = vmatprep.subr.mxu1 %v180_v0  ;;  %59 = vmatprep.subr.mxu0 %v180_v0  ;;  %v19_v24 = vld [vmem:[%s325_s0 + $0x20] sm:$0xf] }
   0xa   :  { %165 = vmatpush1.msra.mxu1 %v32_v5  ;;  %60 = vmatpush1.msra.mxu0 %v32_v5 }
   0xb   :  { %148 = vmatprep.subr.mxu1 %v180_v0  ;;  %61 = vmatprep.subr.mxu0 %v180_v0 }
   0xc   :  { %166 = vmatpush1.msra.mxu1 %v31_v6  ;;  %62 = vmatpush1.msra.mxu0 %v31_v6 }
   0xd   :  { %149 = vmatprep.subr.mxu1 %v180_v0  ;;  %63 = vmatprep.subr.mxu0 %v180_v0 }
   0xe   :  { %167 = vmatpush1.msra.mxu1 %v30_v7  ;;  %64 = vmatpush1.msra.mxu0 %v30_v7 }
   0xf   :  { %150 = vmatprep.subr.mxu1 %v180_v0  ;;  %65 = vmatprep.subr.mxu0 %v180_v0 }
  0x10   :  { %168 = vmatpush1.msra.mxu1 %v29_v8  ;;  %66 = vmatpush1.msra.mxu0 %v29_v8 }
  0x11   :  { %151 = vmatprep.subr.mxu1 %v180_v0  ;;  %67 = vmatprep.subr.mxu0 %v180_v0 }
  0x12   :  { %169 = vmatpush1.msra.mxu1 %v28_v9  ;;  %68 = vmatpush1.msra.mxu0 %v28_v9 }
  0x13   :  { %152 = vmatprep.subr.mxu1 %v180_v0  ;;  %69 = vmatprep.subr.mxu0 %v180_v0 }
  0x14   :  { %170 = vmatpush1.msra.mxu1 %v27_v10  ;;  %70 = vmatpush1.msra.mxu0 %v27_v10 }
  0x15   :  { %153 = vmatprep.subr.mxu1 %v180_v0  ;;  %71 = vmatprep.subr.mxu0 %v180_v0 }
  0x16   :  { %171 = vmatpush1.msra.mxu1 %v26_v11  ;;  %72 = vmatpush1.msra.mxu0 %v26_v11 }
  0x17   :  { %154 = vmatprep.subr.mxu1 %v180_v0  ;;  %73 = vmatprep.subr.mxu0 %v180_v0 }
  0x18   :  { %172 = vmatpush1.msra.mxu1 %v25_v12  ;;  %74 = vmatpush1.msra.mxu0 %v25_v12 }
  0x19   :  { %155 = vmatprep.subr.mxu1 %v180_v0  ;;  %75 = vmatprep.subr.mxu0 %v180_v0 }
  0x1a   :  { %173 = vmatpush1.msra.mxu1 %v24_v13  ;;  %76 = vmatpush1.msra.mxu0 %v24_v13 }
  0x1b   :  { %156 = vmatprep.subr.mxu1 %v180_v0  ;;  %77 = vmatprep.subr.mxu0 %v180_v0 }
  0x1c   :  { %174 = vmatpush1.msra.mxu1 %v23_v14  ;;  %78 = vmatpush1.msra.mxu0 %v23_v14 }
  0x1d   :  { %157 = vmatprep.subr.mxu1 %v180_v0  ;;  %79 = vmatprep.subr.mxu0 %v180_v0 }
  0x1e   :  { %175 = vmatpush1.msra.mxu1 %v22_v15  ;;  %80 = vmatpush1.msra.mxu0 %v22_v15 }
  0x1f   :  { %158 = vmatprep.subr.mxu1 %v180_v0  ;;  %81 = vmatprep.subr.mxu0 %v180_v0 }
  0x20   :  { %176 = vmatpush1.msra.mxu1 %v21_v16  ;;  %82 = vmatpush1.msra.mxu0 %v21_v16 }
  0x21   :  { %159 = vmatprep.subr.mxu1 %v180_v0  ;;  %111 = vmatprep.subr.mxu0 %v180_v0 }
  0x22   :  { %177 = vmatpush2.msra.mxu1 %v38_v17  ;;  %112 = vmatpush2.msra.mxu0 %v38_v17 }
  0x23   :  { %160 = vmatprep.subr.mxu1 %v180_v0  ;;  %141 = vmatprep.mubr.msk.f32.mxu1 %vm41_vm0, %v18_v18 }
  0x24   :  { %178 = vmatpush2.msra.mxu1 %v37_v19  ;;  %113 = vmatprep.subr.mxu0 %v180_v0 }
  0x25   :  { %121 = vmatmul.mubr.f32.vlgmr.msra.gmra.mxu1 %v17_v20  ;;  %114 = vmatpush2.msra.mxu0 %v37_v19 }
  0x26   :  { %140 = vmatprep.mubr.msk.f32.mxu0 %vm41_vm0, %v16_v21  ;;  %142 = vmatprep.mubr.msk.f32.mxu1 %vm41_vm0, %v20_v22 }
  0x27   :  { %116 = vmatmul.mubr.f32.vlgmr.msra.gmra.mxu0 %v15_v23 }
  0x29   :  { %126 = vmatmul.mubr.f32.gmra.mxu1 %v19_v24 }
  0xe5   :  { %v122_v26 = vpop.f32.mrf.mxu1 }
  0xe6   :  { %v123_v27 = vadd.f32 %v122_v26, %v40_v25 }
  0xe7   :  { %v117_v28 = vpop.f32.mrf.mxu0  ;;  %v124_v29 = vpop.f32.mrf.mxu1 }
  0xe8   :  { %133 = vst.msk [vmem:[%s327_s3 + $0x8] sm:$0xff] %vm131_vm1, %v123_v27  ;;  %v118_v30 = vadd.f32 %v117_v28, %v40_v25 }
  0xe9   :  { %v119_v31 = vpop.f32.mrf.mxu0  ;;  %v127_v32 = vpop.f32.mrf.mxu1 }
  0xea   :  { %132 = vst.msk [vmem:[%s327_s3] sm:$0xff] %vm131_vm1, %v118_v30  ;;  %v128_v33 = vadd.f32 %v127_v32, %v40_v25 }
  0xeb   :  { %v129_v34 = vpop.f32.mrf.mxu1 }
  0xec   :  { %135 = vst.msk [vmem:[%s327_s3 + $0x10] sm:$0xf] %vm134_vm2, %v128_v33 }

</bundles_post_ra>
